<compile_context>
chip_gen: v5e
topology: v5e:2x2
jax: 0.10.0
libtpu: 0.0.40
codegen_flags: <defaults>
</compile_context>

<pallas_src>
import math

import jax
import jax.numpy as jnp
from jax.experimental import pallas as pl
from jax.experimental.pallas import tpu as pltpu


def _round_up(x, m):
    return ((x + m - 1) // m) * m


def _vmem_budget_bytes():
    """~78% of physical VMEM (≈100 MiB on v5e/v6e, ≈50 MiB on v7x)."""
    cap = 64 << 20
    try:
        info = pltpu.get_tpu_info()
        cap = int(getattr(info, "vmem_capacity_bytes", cap) or cap)
    except Exception:
        pass
    return int(cap * 0.78)


def _proj_kernel_slab(x_ref, w_ref, b_ref, o_ref, slab_ref, m_ref, l_ref, lse_ref):
    """Single-matmul path: logits cached in a VMEM slab between the two passes.

    x_ref:    (tm, d_model) bf16 token tile (resident across the whole sweep)
    w_ref:    (d_model, tn) bf16 weight tile, (K, N) layout -> native MXU feed
    b_ref:    (1, tn)       f32  bias tile
    o_ref:    (tm, tn)           log-prob output tile (written only in pass 1)
    slab_ref: (nv, tm, tn)       logits slab (written in pass 0, read in pass 1)
    m/l/lse:  (tm, 1)       f32  running max / rescaled sum / final logsumexp
    """
    k = pl.program_id(1)          # 0 = matmul + logsumexp pass, 1 = write pass
    v = pl.program_id(2)          # vocab tile index
    nv = pl.num_programs(2)

    @pl.when(k == 0)
    def _accumulate():
        logits = jnp.dot(x_ref[...], w_ref[...],
                         preferred_element_type=jnp.float32) + b_ref[...]

        @pl.when(v == 0)
        def _init():
            m_ref[...] = jnp.full(m_ref.shape, -jnp.inf, jnp.float32)
            l_ref[...] = jnp.zeros(l_ref.shape, jnp.float32)

        m_prev = m_ref[...]
        m_new = jnp.maximum(m_prev, jnp.max(logits, axis=-1, keepdims=True))
        alpha = jnp.exp(m_prev - m_new)
        l_ref[...] = alpha * l_ref[...] + jnp.sum(
            jnp.exp(logits - m_new), axis=-1, keepdims=True)
        m_ref[...] = m_new
        slab_ref[v] = logits.astype(slab_ref.dtype)

        @pl.when(v == nv - 1)
        def _finalize():
            lse_ref[...] = m_ref[...] + jnp.log(l_ref[...])

    @pl.when(k == 1)
    def _write():
        logits = slab_ref[v].astype(jnp.float32)
        o_ref[...] = (logits - lse_ref[...]).astype(o_ref.dtype)


def _proj_kernel_recompute(x_ref, w_ref, b_ref, o_ref, m_ref, l_ref, lse_ref):
    """Fallback for huge vocab (slab does not fit VMEM): recompute logits in pass 1."""
    k = pl.program_id(1)
    v = pl.program_id(2)
    nv = pl.num_programs(2)

    logits = jnp.dot(x_ref[...], w_ref[...],
                     preferred_element_type=jnp.float32) + b_ref[...]

    @pl.when(k == 0)
    def _accumulate():
        @pl.when(v == 0)
        def _init():
            m_ref[...] = jnp.full(m_ref.shape, -jnp.inf, jnp.float32)
            l_ref[...] = jnp.zeros(l_ref.shape, jnp.float32)

        m_prev = m_ref[...]
        m_new = jnp.maximum(m_prev, jnp.max(logits, axis=-1, keepdims=True))
        alpha = jnp.exp(m_prev - m_new)
        l_ref[...] = alpha * l_ref[...] + jnp.sum(
            jnp.exp(logits - m_new), axis=-1, keepdims=True)
        m_ref[...] = m_new

        @pl.when(v == nv - 1)
        def _finalize():
            lse_ref[...] = m_ref[...] + jnp.log(l_ref[...])

    @pl.when(k == 1)
    def _write():
        o_ref[...] = (logits - lse_ref[...]).astype(o_ref.dtype)


def prepare_projection_params(weight, bias, *, pad_to=1024):
    """One-time weight prep: bf16 cast, transpose to (d_model, V_pad), pad vocab.

    Do this ONCE at init (outside the per-step hot path) so the full vocab matrix
    is never re-cast / re-padded / re-transposed per call.
    weight: (vocab, d_model) f32 (nn.Linear layout); bias: (vocab,) f32.
    Returns (w_prepared (d_model, V_pad) bf16, b_prepared (1, V_pad) f32, vocab).
    """
    vocab, _ = weight.shape
    v_pad = _round_up(vocab, min(pad_to, _round_up(vocab, 128)))
    w = weight.astype(jnp.bfloat16).T          # (d_model, vocab): native MXU (K,N) feed
    b = bias.astype(jnp.float32)
    if v_pad != vocab:
        w = jnp.pad(w, ((0, 0), (0, v_pad - vocab)))
        # Finite sentinel (NOT -inf): exp underflows to exactly 0, so padded
        # columns never contribute to the logsumexp and no -inf-minus--inf NaN
        # path exists even if a whole vocab tile is padding.  Padded output
        # columns are sliced off afterwards.
        b = jnp.pad(b, ((0, v_pad - vocab),), constant_values=-1e30)
    return w, b.reshape(1, v_pad), vocab


def projection_block_prepared(x, w_prepared, b_prepared, vocab, *,
                              tm=512, tn=None, out_dtype=jnp.float32):
    """log_softmax(x @ W.T + b, axis=-1) with pre-prepared (bf16, padded) params.

    x: (..., d_model); w_prepared: (d_model, V_pad) bf16; b_prepared: (1, V_pad) f32.
    Returns (..., vocab) log-probabilities (bf16 matmul, f32 accumulation/softmax).
    """
    *lead, d_model = x.shape
    M = int(math.prod(lead)) if lead else 1
    d_model_w, v_pad = w_prepared.shape
    assert d_model == d_model_w, (d_model, d_model_w)

    # Robustness guards (no-ops when params were prepared correctly).
    if w_prepared.dtype != jnp.bfloat16:
        w_prepared = w_prepared.astype(jnp.bfloat16)
    if b_prepared.ndim == 1:
        b_prepared = b_prepared.reshape(1, -1)
    b_prepared = b_prepared.astype(jnp.float32)

    budget = _vmem_budget_bytes()
    if tn is None:
        tn = 1024 if budget >= (96 << 20) else 512
    tn = min(tn, v_pad)
    if v_pad % tn:
        raise ValueError(f"tn={tn} must divide padded vocab {v_pad}")

    out_bytes = jnp.dtype(out_dtype).itemsize

    # bf16 x -> keep the row tile a multiple of 16 (packed sublane tile).
    tm = min(tm, _round_up(M, 16))

    def footprint(tm_, slab_bytes):
        return (2 * tm_ * d_model * 2            # x tile (double-buffered, bf16)
                + 2 * d_model * tn * 2           # weight tile (bf16)
                + 2 * tn * 4                     # bias tile
                + 2 * tm_ * tn * out_bytes       # output tile
                + 2 * tm_ * tn * 4               # f32 logits temporaries
                + tm_ * v_pad * slab_bytes       # logits slab (0 for fallback)
                + 3 * tm_ * 128 * 4)             # m / l / lse (lane-padded)

    # Shrink the row tile until at least the no-slab footprint fits the budget.
    while footprint(tm, 0) > budget and tm > 64:
        tm = max(64, tm // 2)
    m_pad = _round_up(M, tm)

    if footprint(tm, 4) <= budget:
        slab_dtype = jnp.float32
    elif footprint(tm, 2) <= budget:
        slab_dtype = jnp.bfloat16
    else:
        slab_dtype = None                        # fall back to recompute path

    x2d = x.reshape(M, d_model).astype(jnp.bfloat16)
    if m_pad != M:
        x2d = jnp.pad(x2d, ((0, m_pad - M), (0, 0)))

    nm = m_pad // tm
    nv = v_pad // tn
    grid = (nm, 2, nv)

    x_spec = pl.BlockSpec((tm, d_model), lambda i, k, v: (i, 0))
    out_spec = pl.BlockSpec((tm, tn), lambda i, k, v: (i, k * v))  # parked in pass 0
    lse_scratch = [pltpu.VMEM((tm, 1), jnp.float32),
                   pltpu.VMEM((tm, 1), jnp.float32),
                   pltpu.VMEM((tm, 1), jnp.float32)]

    bytes_x = m_pad * d_model * 2
    bytes_w = d_model * v_pad * 2
    bytes_b = v_pad * 4
    bytes_o = m_pad * v_pad * out_bytes

    if slab_dtype is not None:
        kernel = _proj_kernel_slab
        # Park weight/bias at tile 0 during the write pass: k=1 streams no weights.
        w_spec = pl.BlockSpec((d_model, tn), lambda i, k, v: (0, (1 - k) * v))
        b_spec = pl.BlockSpec((1, tn), lambda i, k, v: (0, (1 - k) * v))
        scratch = [pltpu.VMEM((nv, tm, tn), slab_dtype)] + lse_scratch
        flops = 2 * m_pad * v_pad * d_model
        bytes_accessed = bytes_x + nm * (bytes_w + bytes_b) + bytes_o
    else:
        kernel = _proj_kernel_recompute
        w_spec = pl.BlockSpec((d_model, tn), lambda i, k, v: (0, v))
        b_spec = pl.BlockSpec((1, tn), lambda i, k, v: (0, v))
        scratch = lse_scratch
        flops = 4 * m_pad * v_pad * d_model
        bytes_accessed = bytes_x + 2 * nm * (bytes_w + bytes_b) + bytes_o

    out2d = pl.pallas_call(
        kernel,
        out_shape=jax.ShapeDtypeStruct((m_pad, v_pad), out_dtype),
        grid_spec=pltpu.PrefetchScalarGridSpec(
            num_scalar_prefetch=0,
            grid=grid,
            in_specs=[x_spec, w_spec, b_spec],
            out_specs=out_spec,
            scratch_shapes=scratch,
        ),
        compiler_params=pltpu.CompilerParams(
            dimension_semantics=("parallel", "arbitrary", "arbitrary"),
            vmem_limit_bytes=budget,
        ),
        cost_estimate=pl.CostEstimate(
            flops=flops,
            transcendentals=m_pad * v_pad,
            bytes_accessed=bytes_accessed,
        ),
    )(x2d, w_prepared, b_prepared)

    return out2d[:M, :vocab].reshape(*lead, vocab)


def projection_block(x, weight, bias, **kwargs):
    """Convenience wrapper (casts/pads the weight per call — prefer the
    prepare_projection_params + projection_block_prepared split in hot paths)."""
    w_p, b_p, vocab = prepare_projection_params(weight, bias)
    return projection_block_prepared(x, w_p, b_p, vocab, **kwargs)


if __name__ == "__main__":
    # Small shapes consistent with the module's forward.
    batch, seq, d_model, vocab_size = 2, 8, 32, 128

    key = jax.random.PRNGKey(0)
    kx, kw, kb = jax.random.split(key, 3)

    # Deterministic params mirroring nn.Linear's uniform(-1/sqrt(in), 1/sqrt(in)).
    bound = 1.0 / math.sqrt(d_model)
    weight = jax.random.uniform(kw, (vocab_size, d_model),
                                minval=-bound, maxval=bound, dtype=jnp.float32)
    bias = jax.random.uniform(kb, (vocab_size,),
                              minval=-bound, maxval=bound, dtype=jnp.float32)
    x = jax.random.normal(kx, (batch, seq, d_model), dtype=jnp.float32)

    # Weight prep hoisted out of the hot path (done once).
    w_prep, b_prep, vocab = prepare_projection_params(weight, bias)

    out = projection_block_prepared(x, w_prep, b_prep, vocab)
    out = jax.block_until_ready(out)

    # Pure-JAX reference with matching bf16 matmul inputs, f32 accumulation/softmax.
    xb = x.reshape(-1, d_model).astype(jnp.bfloat16)
    wb = weight.astype(jnp.bfloat16)
    logits_ref = jnp.dot(xb, wb.T, preferred_element_type=jnp.float32) + bias
    ref = jax.nn.log_softmax(logits_ref, axis=-1).reshape(batch, seq, vocab_size)

    assert out.shape == (batch, seq, vocab_size)
    assert jnp.allclose(out, ref, atol=2e-3, rtol=2e-3), "mismatch vs reference"

    print("KERNEL_OK")
</pallas_src>

<mosaic_0001>
module attributes {stable_mosaic.version = 11 : i64} {
  func.func @_proj_kernel_slab(%arg0: i32, %arg1: i32, %arg2: i32, %arg3: memref<16x32xbf16, #tpu.memory_space<vmem>>, %arg4: memref<32x128xbf16, #tpu.memory_space<vmem>>, %arg5: memref<1x128xf32, #tpu.memory_space<vmem>>, %arg6: memref<16x128xf32, #tpu.memory_space<vmem>>, %arg7: memref<1x16x128xf32, #tpu.memory_space<vmem>>, %arg8: memref<16x1xf32, #tpu.memory_space<vmem>>, %arg9: memref<16x1xf32, #tpu.memory_space<vmem>>, %arg10: memref<16x1xf32, #tpu.memory_space<vmem>>) attributes {dimension_semantics = [#tpu.dimension_semantics<parallel>, #tpu.dimension_semantics<arbitrary>, #tpu.dimension_semantics<arbitrary>], iteration_bounds = array<i64: 1, 2, 1>, scalar_prefetch = 0 : i64, scratch_operands = 4 : i64, tpu.core_type = #tpu.core_type<tc>, window_params = [{transform_indices = @transform_0, window_bounds = array<i64: 16, 32>}, {transform_indices = @transform_1, window_bounds = array<i64: 32, 128>}, {transform_indices = @transform_2, window_bounds = array<i64: 1, 128>}, {transform_indices = @transform_3, window_bounds = array<i64: 16, 128>}]} {
    %c0_i32 = arith.constant 0 : i32
    %0 = arith.cmpi eq, %arg1, %c0_i32 : i32
    %1 = arith.extui %0 : i1 to i32
    %c0_i32_0 = arith.constant 0 : i32
    %2 = arith.cmpi ne, %1, %c0_i32_0 : i32
    scf.if %2 {
      %c0 = arith.constant 0 : index
      %c0_2 = arith.constant 0 : index
      %6 = vector.load %arg3[%c0, %c0_2] : memref<16x32xbf16, #tpu.memory_space<vmem>>, vector<16x32xbf16>
      %c0_3 = arith.constant 0 : index
      %c0_4 = arith.constant 0 : index
      %7 = vector.load %arg4[%c0_3, %c0_4] : memref<32x128xbf16, #tpu.memory_space<vmem>>, vector<32x128xbf16>
      %cst = arith.constant dense<0.000000e+00> : vector<16x128xf32>
      %8 = tpu.matmul %6, %7, %cst {dimension_numbers = #tpu.dot_dimension_numbers<[1], [0], [0], [1], [0, 0, 1, 1], [], []>} : vector<16x32xbf16>, vector<32x128xbf16>, vector<16x128xf32> -> vector<16x128xf32>
      %c0_5 = arith.constant 0 : index
      %c0_6 = arith.constant 0 : index
      %9 = vector.load %arg5[%c0_5, %c0_6] : memref<1x128xf32, #tpu.memory_space<vmem>>, vector<1x128xf32>
      %10 = vector.broadcast %9 : vector<1x128xf32> to vector<16x128xf32>
      %11 = arith.addf %8, %10 : vector<16x128xf32>
      %c0_i32_7 = arith.constant 0 : i32
      %12 = arith.cmpi eq, %arg2, %c0_i32_7 : i32
      %13 = arith.extui %12 : i1 to i32
      %c0_i32_8 = arith.constant 0 : i32
      %14 = arith.cmpi ne, %13, %c0_i32_8 : i32
      scf.if %14 {
        %cst_23 = arith.constant 0xFF800000 : f32
        %38 = vector.broadcast %cst_23 : f32 to vector<16x1xf32>
        %c0_24 = arith.constant 0 : index
        %c0_25 = arith.constant 0 : index
        %39 = vector.load %arg8[%c0_24, %c0_25] : memref<16x1xf32, #tpu.memory_space<vmem>>, vector<16x1xf32>
        tpu.vector_store %arg8[%c0_24, %c0_25], %38 {strides = array<i32>} : memref<16x1xf32, #tpu.memory_space<vmem>>, vector<16x1xf32>,
        %cst_26 = arith.constant 0.000000e+00 : f32
        %40 = vector.broadcast %cst_26 : f32 to vector<16x1xf32>
        %c0_27 = arith.constant 0 : index
        %c0_28 = arith.constant 0 : index
        %41 = vector.load %arg9[%c0_27, %c0_28] : memref<16x1xf32, #tpu.memory_space<vmem>>, vector<16x1xf32>
        tpu.vector_store %arg9[%c0_27, %c0_28], %40 {strides = array<i32>} : memref<16x1xf32, #tpu.memory_space<vmem>>, vector<16x1xf32>,
      } else {
      }
      %c0_9 = arith.constant 0 : index
      %c0_10 = arith.constant 0 : index
      %15 = vector.load %arg8[%c0_9, %c0_10] : memref<16x1xf32, #tpu.memory_space<vmem>>, vector<16x1xf32>
      %cst_11 = arith.constant dense<0xFF800000> : vector<16xf32>
      %16 = vector.multi_reduction <maximumf>, %11, %cst_11 [1] : vector<16x128xf32> to vector<16xf32>
      %17 = vector.shape_cast %16 : vector<16xf32> to vector<16x1xf32>
      %18 = arith.maximumf %15, %17 : vector<16x1xf32>
      %19 = arith.subf %15, %18 : vector<16x1xf32>
      %20 = math.exp %19 : vector<16x1xf32>
      %c0_12 = arith.constant 0 : index
      %c0_13 = arith.constant 0 : index
      %21 = vector.load %arg9[%c0_12, %c0_13] : memref<16x1xf32, #tpu.memory_space<vmem>>, vector<16x1xf32>
      %22 = arith.mulf %20, %21 : vector<16x1xf32>
      %23 = vector.broadcast %18 : vector<16x1xf32> to vector<16x128xf32>
      %24 = arith.subf %11, %23 : vector<16x128xf32>
      %25 = math.exp %24 : vector<16x128xf32>
      %cst_14 = arith.constant dense<0.000000e+00> : vector<16xf32>
      %26 = vector.multi_reduction <add>, %25, %cst_14 [1] : vector<16x128xf32> to vector<16xf32>
      %27 = vector.shape_cast %26 : vector<16xf32> to vector<16x1xf32>
      %28 = arith.addf %22, %27 : vector<16x1xf32>
      %c0_15 = arith.constant 0 : index
      %c0_16 = arith.constant 0 : index
      %29 = vector.load %arg9[%c0_15, %c0_16] : memref<16x1xf32, #tpu.memory_space<vmem>>, vector<16x1xf32>
      tpu.vector_store %arg9[%c0_15, %c0_16], %28 {strides = array<i32>} : memref<16x1xf32, #tpu.memory_space<vmem>>, vector<16x1xf32>,
      %c0_17 = arith.constant 0 : index
      %c0_18 = arith.constant 0 : index
      %30 = vector.load %arg8[%c0_17, %c0_18] : memref<16x1xf32, #tpu.memory_space<vmem>>, vector<16x1xf32>
      tpu.vector_store %arg8[%c0_17, %c0_18], %18 {strides = array<i32>} : memref<16x1xf32, #tpu.memory_space<vmem>>, vector<16x1xf32>,
      %31 = arith.index_cast %arg2 : i32 to index
      %c0_19 = arith.constant 0 : index
      %c0_20 = arith.constant 0 : index
      %32 = vector.load %arg7[%31, %c0_19, %c0_20] : memref<1x16x128xf32, #tpu.memory_space<vmem>>, vector<1x16x128xf32>
      %33 = vector.shape_cast %32 : vector<1x16x128xf32> to vector<16x128xf32>
      %34 = vector.shape_cast %11 : vector<16x128xf32> to vector<1x16x128xf32>
      tpu.vector_store %arg7[%31, %c0_19, %c0_20], %34 {strides = array<i32>} : memref<1x16x128xf32, #tpu.memory_space<vmem>>, vector<1x16x128xf32>,
      %c0_i32_21 = arith.constant 0 : i32
      %35 = arith.cmpi eq, %arg2, %c0_i32_21 : i32
      %36 = arith.extui %35 : i1 to i32
      %c0_i32_22 = arith.constant 0 : i32
      %37 = arith.cmpi ne, %36, %c0_i32_22 : i32
      scf.if %37 {
        %c0_23 = arith.constant 0 : index
        %c0_24 = arith.constant 0 : index
        %38 = vector.load %arg8[%c0_23, %c0_24] : memref<16x1xf32, #tpu.memory_space<vmem>>, vector<16x1xf32>
        %c0_25 = arith.constant 0 : index
        %c0_26 = arith.constant 0 : index
        %39 = vector.load %arg9[%c0_25, %c0_26] : memref<16x1xf32, #tpu.memory_space<vmem>>, vector<16x1xf32>
        %40 = math.log %39 : vector<16x1xf32>
        %41 = arith.addf %38, %40 : vector<16x1xf32>
        %c0_27 = arith.constant 0 : index
        %c0_28 = arith.constant 0 : index
        %42 = vector.load %arg10[%c0_27, %c0_28] : memref<16x1xf32, #tpu.memory_space<vmem>>, vector<16x1xf32>
        tpu.vector_store %arg10[%c0_27, %c0_28], %41 {strides = array<i32>} : memref<16x1xf32, #tpu.memory_space<vmem>>, vector<16x1xf32>,
      } else {
      }
    } else {
    }
    %c1_i32 = arith.constant 1 : i32
    %3 = arith.cmpi eq, %arg1, %c1_i32 : i32
    %4 = arith.extui %3 : i1 to i32
    %c0_i32_1 = arith.constant 0 : i32
    %5 = arith.cmpi ne, %4, %c0_i32_1 : i32
    scf.if %5 {
      %6 = arith.index_cast %arg2 : i32 to index
      %c0 = arith.constant 0 : index
      %c0_2 = arith.constant 0 : index
      %7 = vector.load %arg7[%6, %c0, %c0_2] : memref<1x16x128xf32, #tpu.memory_space<vmem>>, vector<1x16x128xf32>
      %8 = vector.shape_cast %7 : vector<1x16x128xf32> to vector<16x128xf32>
      %c0_3 = arith.constant 0 : index
      %c0_4 = arith.constant 0 : index
      %9 = vector.load %arg10[%c0_3, %c0_4] : memref<16x1xf32, #tpu.memory_space<vmem>>, vector<16x1xf32>
      %10 = vector.broadcast %9 : vector<16x1xf32> to vector<16x128xf32>
      %11 = arith.subf %8, %10 : vector<16x128xf32>
      %c0_5 = arith.constant 0 : index
      %c0_6 = arith.constant 0 : index
      %12 = vector.load %arg6[%c0_5, %c0_6] : memref<16x128xf32, #tpu.memory_space<vmem>>, vector<16x128xf32>
      tpu.vector_store %arg6[%c0_5, %c0_6], %11 {strides = array<i32>} : memref<16x128xf32, #tpu.memory_space<vmem>>, vector<16x128xf32>,
    } else {
    }
    return
  }
  func.func @transform_0(%arg0: i32, %arg1: i32, %arg2: i32) -> (i32, i32) {
    %c0_i32 = arith.constant 0 : i32
    %c0_i32_0 = arith.constant 0 : i32
    return %arg0, %c0_i32 : i32, i32
  }
  func.func @transform_1(%arg0: i32, %arg1: i32, %arg2: i32) -> (i32, i32) {
    %c1_i32 = arith.constant 1 : i32
    %0 = arith.subi %c1_i32, %arg1 : i32
    %1 = arith.muli %0, %arg2 : i32
    %c0_i32 = arith.constant 0 : i32
    %c0_i32_0 = arith.constant 0 : i32
    return %c0_i32, %1 : i32, i32
  }
  func.func @transform_2(%arg0: i32, %arg1: i32, %arg2: i32) -> (i32, i32) {
    %c1_i32 = arith.constant 1 : i32
    %0 = arith.subi %c1_i32, %arg1 : i32
    %1 = arith.muli %0, %arg2 : i32
    %c0_i32 = arith.constant 0 : i32
    %c0_i32_0 = arith.constant 0 : i32
    return %c0_i32, %1 : i32, i32
  }
  func.func @transform_3(%arg0: i32, %arg1: i32, %arg2: i32) -> (i32, i32) {
    %0 = arith.muli %arg1, %arg2 : i32
    %c0_i32 = arith.constant 0 : i32
    return %arg0, %0 : i32, i32
  }
}

</mosaic_0001>

<bundles_post_ra>
// kernel: tpu_custom_call.1
= control target key start
LH: loop header
LB: loop body
LE: loop exit
PB: predicated region body
PF: predicated region fallthrough
CT: control target
= control target key end

     0   :  { %8 = vsyncpa [#allocation7], 0  ;;  %s913_s0 = inlined_call_operand.hbm [shape: bf16[16,32], index: 0, kind: input, shape index: {}]   ;;  %s914_s1 = inlined_call_operand.hbm [shape: bf16[32,128], index: 1, kind: input, shape index: {}]   ;;  %s915_s2 = inlined_call_operand.vmem [shape: f32[1,128], index: 2, kind: input, shape index: {}]   ;;  %s916_s3 = inlined_call_operand.hbm [shape: f32[16,128], index: 3, kind: output, shape index: {}]  }
   0x1   :  { %9 = vsyncpa [#allocation10], 0 }
   0x2   :  { %11 = vsyncpa [#allocation10 + $0x1], 0 }
   0x3   :  { %12 = vsyncpa [#allocation8], 0 }
   0x4   :  { %14 = vsyncpa [#allocation8 + $0x1], 0  ;;  %s825_s12 = smov 0   ;;  %s827_s13 = smov 0  }
   0x5   :  { %s829_s14 = smov 0  }
   0x6 LB: > { %s555_s15 = sadd.s32 4294967295, %s792_s14   ;;  %s556_s16 = sadd.s32 4294967294, %s792_s14   ;;  %s792_s14 = sphi %s829_s14, %s20_s14   ;;  %s788_s13 = sphi %s827_s13, %s920_s13   ;;  %s784_s12 = sphi %s825_s12, %s919_s12  }
   0x7   : > { %s35_s17 = sadd.s32 1, %s788_s13  ;;  %p557_p0 = scmp.ge.s32.totalorder %s792_s14, 1 }
   0x8   : > { %p37_p1 = scmp.ge.s32.totalorder %s35_s17, 2  ;;  %p160_p2 = scmp.lt.s32.totalorder %s792_s14, 3 }
   0x9   : > { %p847_p3 = scmp.eq.s32.totalorder %s555_s15, 0  ;;  %s174_s22 = sshll.u32 %s913_s0, 4  ;;  %s175_s22 = int_to_ptr.hbm [resolvable:$true] %s174_s22 }
   0xa   : > { %s922_s17 = smov (%p37_p1, %s35_s17), 0  ;;  %p853_p4 = pnand %p557_p0, %p160_p2 }
   0xb   : > { %s794_s23 = smov [#allocation6]   ;;  %p559_p7 = scmp.ge.s32.totalorder %s792_s14, 2 }
   0xc   : > { %p599_p5 = pneg %p853_p4  ;;  %s176_s24 = sshll.u32 %s794_s23, 4  ;;  %s177_s24 = int_to_ptr.vmem [resolvable:$true] %s176_s24 }
   0xd   : > { %p612_p8 = scmp.lt.s32.totalorder %s792_s14, 2  ;;  %s795_s25 = smov 64  }
   0xe   : > { %p600_p6 = pnand %p847_p3, %p599_p5  ;;  %s796_s26 = smov 4  }
   0xf   : > { %p613_p9 = scmp.eq.s32.totalorder %s792_s14, 0  ;;  %s201_s29 = sshll.u32 %s914_s1, 4  ;;  %s202_s29 = int_to_ptr.hbm [resolvable:$true] %s201_s29 }
  0x10   : > { %602 = dma.hbm_to_vmem [thread:$0]  (!%p600_p6), %s175_s22, 128, %s177_s24, [#allocation7], %s795_s25, %s795_s25, %s796_s26  }
  0x11   : > { %s797_s30 = smov [#allocation9]   ;;  %p604_p10 = pnand %p613_p9, %p612_p8 }
  0x12   : > { %s203_s4 = sshll.u32 %s797_s30, 4  ;;  %225 = sbr.rel (%p853_p4) target bundleno = 698 (0x2ba), region = 32  ;;  %s204_s4 = int_to_ptr.vmem [resolvable:$true] %s203_s4 }
  0x13   : > { %606 = dma.hbm_to_vmem [thread:$0]  (!%p604_p10), %s202_s29, 256, %s204_s4, [#allocation10], %s795_s25, %s795_s25, %s796_s26  }
  0x17   : > { %771 = dma.done.wait (%p847_p3), [#allocation7], 128  }
  0x18   : > { %773 = vsyncadd (%p847_p3), [#allocation7], 4294967168 }
  0x19   : > { %775 = dma.done.wait (%p847_p3), [#allocation10], 256  }
  0x1a   : > { %777 = vsyncadd (%p847_p3), [#allocation10], 4294967040  ;;  %p565_p11 = scmp.ne.s32.totalorder %s784_s12, 0 }
  0x1c   : > { %281 = sbr.rel (%p565_p11) target bundleno = 559 (0x22f), region = 44 }
  0x21   : > { %v586_v0 = vld [vmem:[#allocation9 + $0x8] sm:$0xff]  ;;  %v585_v1 = vld [vmem:[#allocation9] sm:$0xff]  ;;  %v584_v2 = vld [vmem:[#allocation6] sm:$0xff]  ;;  %vm309_vm0 = vcmask 261120   ;;  %vm331_vm1 = vcmask 7168   ;;  %v798_v3 = vmov -inf  }
  0x22   : > { %319 = vmatpush.bf16.msra.mxu0 %v586_v0  ;;  %332 = vst.msk [vmem:[#allocation3] sm:$0xff] %vm331_vm1, %v798_v3  ;;  %v656_v4 = vld [vmem:[%s915_s2] ss:$0 sm:$0xff]  ;;  %v799_v9 = vmov 0   ;;  %v800_v10 = vmov 0.0  }
  0x23   : > { %333 = vst.msk [vmem:[#allocation3 + $0x8] sm:$0xff] %vm331_vm1, %v798_v3  ;;  %654 = vset.pattern.permute.xlu1 %v799_v9  ;;  %655 = vset.pattern.permute.xlu0 %v799_v9 }
  0x24   : > { %334 = vst.msk [vmem:[#allocation4] sm:$0xff] %vm331_vm1, %v800_v10 }
  0x25   : > { %335 = vst.msk [vmem:[#allocation4 + $0x8] sm:$0xff] %vm331_vm1, %v800_v10 }
  0x26   : > { %320 = vmatpush.bf16.msra.mxu0 %v585_v1 }
  0x29   : > { %578 = vmatmul.msk.bf16.vlgmr.msra.gmra.mxu0 %vm309_vm0, %v584_v2  ;;  %v336_v11 = vld [vmem:[#allocation3] sm:$0xff] }
  0x2a   : > { %v337_v15 = vld [vmem:[#allocation3 + $0x8] sm:$0xff] }
  0x2b   : > { %v350_v30 = vld [vmem:[#allocation4] sm:$0xff] }
  0x2c   : > { %v351_v35 = vld [vmem:[#allocation4 + $0x8] sm:$0xff] }
  0xa6   : > { %v322_v5 = vpop.f32.mrf.mxu0 }
  0xa7   : > { %v323_v6 = vadd.f32 %v656_v4, %v322_v5 }
  0xa9   : > { %383 = vst [vmem:[#allocation2] sm:$0xff] %v323_v6  ;;  %338 = vmax.xlane.f32.xlu0 %v323_v6 }
  0xae   : > { %v324_v7 = vpop.f32.mrf.mxu0 }
  0xaf   : > { %v325_v8 = vadd.f32 %v656_v4, %v324_v7 }
  0xb1   : > { %384 = vst [vmem:[#allocation2 + $0x8] sm:$0xff] %v325_v8  ;;  %340 = vmax.xlane.f32.xlu0 %v325_v8 }
 0x11c   : > { %v339_v12 = vpop.xlane.xlu0 %338 }
 0x11d   : > { %v342_v13 = vmax.f32 %v336_v11, %v339_v12 }
 0x11f   : > { %v344_v14 = vsub.f32 %v336_v11, %v342_v13  ;;  %379 = vst.msk [vmem:[#allocation3] sm:$0xff] %vm331_vm1, %v342_v13  ;;  %356 = vperm.xlu1 %654, %v342_v13  }
 0x121   : > { %v346_v27 = vmul.f32 1.442695, %v344_v14 }
 0x124   : > { %v341_v16 = vpop.xlane.xlu0 %340 }
 0x125   : > { %v343_v17 = vmax.f32 %v337_v15, %v341_v16 }
 0x126   : > { %v388_v43 = vld [vmem:[#allocation3] sm:$0xff] }
 0x127   : > { %v345_v18 = vsub.f32 %v337_v15, %v343_v17  ;;  %380 = vst.msk [vmem:[#allocation3 + $0x8] sm:$0xff] %vm331_vm1, %v343_v17  ;;  %361 = vperm.xlu1 %654, %v343_v17  }
 0x129   : > { %v348_v28 = vmul.f32 1.442695, %v345_v18 }
 0x12e   : > { %v389_v47 = vld [vmem:[#allocation3 + $0x8] sm:$0xff] }
 0x191   : > { %v357_v19 = vpop.permute.xlu1 %356 }
 0x192   : > { %v364_v20 = vsub.f32 %v323_v6, %v357_v19 }
 0x194   : > { %v366_v21 = vmul.f32 1.442695, %v364_v20 }
 0x196   : > { %657 = vpow2.f32 %v366_v21 }
 0x199   : > { %v362_v22 = vpop.permute.xlu1 %361 }
 0x19a   : > { %v365_v23 = vsub.f32 %v325_v8, %v362_v22 }
 0x19c   : > { %v658_v24 = vpop.eup %657  ;;  %v368_v25 = vmul.f32 1.442695, %v365_v23 }
 0x19d   : > { %370 = vadd.xlane.f32.xlu2 %v658_v24 }
 0x19e   : > { %659 = vpow2.f32 %v368_v25 }
 0x19f   : > { %661 = vpow2.f32 %v346_v27 }
 0x1a0   : > { %663 = vpow2.f32 %v348_v28 }
 0x1a4   : > { %v660_v26 = vpop.eup %659 }
 0x1a5   : > { %372 = vadd.xlane.f32.xlu2 %v660_v26  ;;  %v662_v29 = vpop.eup %661 }
 0x1a6   : > { %v352_v31 = vmul.f32 %v662_v29, %v350_v30  ;;  %v664_v34 = vpop.eup %663 }
 0x1a7   : > { %v353_v36 = vmul.f32 %v664_v34, %v351_v35 }
 0x210   : > { %v371_v32 = vpop.xlane.xlu2 %370 }
 0x211   : > { %v374_v33 = vadd.f32 %v371_v32, %v352_v31 }
 0x213   : > { %377 = vst.msk [vmem:[#allocation4] sm:$0xff] %vm331_vm1, %v374_v33 }
 0x218   : > { %v373_v37 = vpop.xlane.xlu2 %372 }
 0x219   : > { %v375_v38 = vadd.f32 %v373_v37, %v353_v36 }
 0x21a   : > { %v390_v39 = vld [vmem:[#allocation4] sm:$0xff] }
 0x21b   : > { %665 = vlog2.f32 %v390_v39  ;;  %378 = vst.msk [vmem:[#allocation4 + $0x8] sm:$0xff] %vm331_vm1, %v375_v38 }
 0x221   : > { %v666_v40 = vpop.eup %665 }
 0x222   : > { %v393_v41 = vmul.f32 0.6931472, %v666_v40  ;;  %v391_v42 = vld [vmem:[#allocation4 + $0x8] sm:$0xff] }
 0x223   : > { %667 = vlog2.f32 %v391_v42 }
 0x224   : > { %v396_v44 = vadd.f32 %v393_v41, %v388_v43 }
 0x226   : > { %398 = vst.msk [vmem:[#allocation5] sm:$0xff] %vm331_vm1, %v396_v44 }
 0x229   : > { %v668_v45 = vpop.eup %667 }
 0x22a   : > { %v395_v46 = vmul.f32 0.6931472, %v668_v45 }
 0x22c   : > { %v397_v48 = vadd.f32 %v395_v46, %v389_v47 }
 0x22e   : > { %399 = vst.msk [vmem:[#allocation5 + $0x8] sm:$0xff] %vm331_vm1, %v397_v48 }
 0x22f PF: > { %p579_p12 = scmp.ne.s32.totalorder %s784_s12, 1 }
 0x231   : > { %403 = sbr.rel (%p579_p12) target bundleno = 694 (0x2b6), region = 56 }
 0x236   : > { %v408_v49 = vld [vmem:[#allocation5] sm:$0xff]  ;;  %v801_v50 = vmov 0   ;;  %v409_v51 = vld [vmem:[#allocation5 + $0x8] sm:$0xff]  ;;  %v406_v52 = vld [vmem:[#allocation2] sm:$0xff] }
 0x237   : > { %669 = vset.pattern.permute.xlu0 %v801_v50  ;;  %v407_v55 = vld [vmem:[#allocation2 + $0x8] sm:$0xff] }
 0x238   : > { %412 = vperm.xlu0 %669, %v408_v49  }
 0x240   : > { %417 = vperm.xlu0 %669, %v409_v51  }
 0x2aa   : > { %v413_v53 = vpop.permute.xlu0 %412 }
 0x2ab   : > { %v420_v54 = vsub.f32 %v406_v52, %v413_v53 }
 0x2ad   : > { %422 = vst [vmem:[#allocation11] sm:$0xff] %v420_v54 }
 0x2b2   : > { %v418_v56 = vpop.permute.xlu0 %417 }
 0x2b3   : > { %v421_v57 = vsub.f32 %v407_v55, %v418_v56 }
 0x2b5   : > { %423 = vst [vmem:[#allocation11 + $0x8] sm:$0xff] %v421_v57 }
 0x2b6 PF: > { %p616_p13 = scmp.eq.s32.totalorder %s555_s15, 1  ;;  %s441_s9 = sshll.u32 %s916_s3, 4  ;;  %s442_s9 = int_to_ptr.hbm [resolvable:$true] %s441_s9 }
 0x2b7   : > { %s802_s10 = smov [#allocation11]   ;;  %s803_s12 = smov 128  }
 0x2b8   : > { %s439_s11 = sshll.u32 %s802_s10, 4  ;;  %s804_s18 = smov 8   ;;  %s440_s11 = int_to_ptr.vmem [resolvable:$true] %s439_s11 }
 0x2b9   : > { %596 = dma.vmem_to_hbm [thread:$0]  (%p616_p13), %s440_s11, 256, %s442_s9, [#allocation8], %s803_s12, %s803_s12, %s804_s18  }
 0x2ba PF: > { %p618_p0 = scmp.eq.s32.totalorder %s556_s16, 1 }
 0x2bc   : > { %p608_p1 = pnand %p618_p0, %p559_p7 }
 0x2be   : > { %p609_p2 = pneg %p608_p1 }
 0x2c0   : > { %779 = dma.done.wait (%p609_p2), [#allocation8], 256  }
 0x2c1   : > { %781 = vsyncadd (%p609_p2), [#allocation8], 4294967040  ;;  %s20_s14 = sadd.s32 1, %s792_s14   ;;  %s919_s12 = smov %s788_s13 }
 0x2c2   : > { %p17_p3 = scmp.ge.s32.totalorder %s20_s14, 4   ;;  %s920_s13 = smov %s922_s17 }
 0x2c4   :  { %19 = sbr.rel (!%p17_p3) target bundleno = 6 (0x6), region = 104 }
 0x2c9   :  { %463 = vsyncpa [#allocation7], 1 }
 0x2ca   :  { %465 = vsyncpa [#allocation7 + $0x1], 1 }
 0x2cb   :  { %466 = vsyncpa [#allocation10], 1 }
 0x2cc   :  { %468 = vsyncpa [#allocation10 + $0x1], 1 }
 0x2cd   :  { %469 = vsyncpa [#allocation8], 1 }
 0x2ce   :  { %471 = vsyncpa [#allocation8 + $0x1], 1 }

</bundles_post_ra>
